<compile_context>
chip_gen: v5e
topology: v5e:2x2
jax: 0.10.0
libtpu: 0.0.40
codegen_flags: <defaults>
</compile_context>

<pallas_src>
import jax
import jax.numpy as jnp
from jax.experimental import pallas as pl
from jax.experimental.pallas import tpu as pltpu


def esm_head_kernel(len_ref, rep_ref, w1_ref, b1_ref, w2t_ref, b2_ref, out_ref):
    """len_ref: SMEM (1,) int32, true token count incl. BOS/EOS.
       rep_ref: VMEM [L_max, D] (zero-padded past the true length).
       w1_ref : VMEM [D, D];  b1_ref: VMEM [1, D].
       w2t_ref: VMEM [1, D]  (second projection, lane-dense).
       b2_ref : SMEM (1, 1) f32.
       out_ref: VMEM (1, 1) f32."""
    n = len_ref[0]
    l_max = rep_ref.shape[0]

    # Masked full-tile reduction (no sublane-unaligned slice): keep rows
    # 1 .. n-2, i.e. exclude BOS (row 0), EOS (row n-1) and padding.
    row_ids = jax.lax.broadcasted_iota(jnp.int32, (l_max, 1), 0)
    keep = (row_ids > 0) & (row_ids < n - 1)
    body = jnp.where(keep, rep_ref[...], 0.0)                    # [L_max, D]
    denom = (n - 2).astype(jnp.float32)
    mean = jnp.sum(body, axis=0, keepdims=True) / denom          # [1, D]

    # Linear(D, D) + ReLU on the MXU, f32 accumulation.
    h = jnp.dot(mean, w1_ref[...],
                preferred_element_type=jnp.float32) + b1_ref[...]  # [1, D]
    h = jnp.maximum(h, 0.0)

    # Linear(D, 1) on the VPU/XLU: multiply + lane reduction instead of a
    # second MXU pass that would produce a single scalar.
    y = jnp.sum(h * w2t_ref[...], axis=-1, keepdims=True) + b2_ref[0, 0]
    out_ref[...] = y


def tm_head(esmrep, w1, b1, w2, b2, *, l_max=None):
    """esmrep: [1, L, D] f32 ESM representation (incl. BOS/EOS).
    Returns {'tm': [1] f32}, matching the PyTorch module's output."""
    assert esmrep.shape[0] == 1
    rep = esmrep[0]                                   # [L, D]
    L, D = rep.shape
    if l_max is None:
        l_max = ((L + 7) // 8) * 8                    # sublane-aligned pad
    assert l_max >= L

    rep_padded = jnp.pad(rep, ((0, l_max - L), (0, 0)))
    seq_len = jnp.array([L], dtype=jnp.int32)         # dynamic length (SMEM)
    w2t = w2.reshape(1, D)                            # lane-dense [1, D]
    b2_2d = b2.reshape(1, 1)

    cost = pl.CostEstimate(
        flops=2 * D * D + 4 * l_max * D,
        transcendentals=0,
        bytes_accessed=4 * (D * D + l_max * D + 3 * D + 3),
    )

    out = pl.pallas_call(
        esm_head_kernel,
        out_shape=jax.ShapeDtypeStruct((1, 1), jnp.float32),
        in_specs=[
            pl.BlockSpec(memory_space=pltpu.MemorySpace.SMEM),   # seq_len
            pl.BlockSpec(memory_space=pltpu.MemorySpace.VMEM),   # rep
            pl.BlockSpec(memory_space=pltpu.MemorySpace.VMEM),   # w1
            pl.BlockSpec(memory_space=pltpu.MemorySpace.VMEM),   # b1
            pl.BlockSpec(memory_space=pltpu.MemorySpace.VMEM),   # w2^T
            pl.BlockSpec(memory_space=pltpu.MemorySpace.SMEM),   # b2
        ],
        out_specs=pl.BlockSpec(memory_space=pltpu.MemorySpace.VMEM),
        cost_estimate=cost,
    )(seq_len, rep_padded, w1, b1, w2t, b2_2d)

    tm = out[0]                    # [1,1] -> [1]  (torch.squeeze(..., -1), B=1)
    return {'tm': tm}


if __name__ == "__main__":
    # Small, self-consistent shapes: batch=1 (asserted by the module),
    # L = 10 tokens (BOS + 8 residues + EOS), D = 256 embedding dim.
    L, D = 10, 256
    key = jax.random.PRNGKey(0)
    k_rep, k_w1, k_b1, k_w2, k_b2 = jax.random.split(key, 5)

    esmrep = jax.random.normal(k_rep, (1, L, D), dtype=jnp.float32)

    # MLP head parameters: Linear(D, D) and Linear(D, 1), stored [in, out]
    # so the kernel computes plain x @ W + b.
    w1 = jax.random.normal(k_w1, (D, D), dtype=jnp.float32) * 0.02
    b1 = jax.random.normal(k_b1, (1, D), dtype=jnp.float32) * 0.02
    w2 = jax.random.normal(k_w2, (D, 1), dtype=jnp.float32) * 0.02
    b2 = jax.random.normal(k_b2, (1, 1), dtype=jnp.float32) * 0.02

    out = tm_head(esmrep, w1, b1, w2, b2)
    jax.block_until_ready(out['tm'])

    # Pure-JAX reference check of the head computation.
    mean_ref = jnp.mean(esmrep[:, 1:-1, :], axis=1)   # [1, D]
    h_ref = jnp.maximum(mean_ref @ w1 + b1, 0.0)
    tm_ref = jnp.squeeze(h_ref @ w2 + b2, -1)         # [1]
    assert jnp.allclose(out['tm'], tm_ref, atol=1e-4, rtol=1e-4), (
        out['tm'], tm_ref)

    print("KERNEL_OK")
</pallas_src>

<mosaic_0001>
module attributes {stable_mosaic.version = 11 : i64} {
  func.func @esm_head_kernel(%arg0: memref<1xi32, #tpu.memory_space<smem>>, %arg1: memref<16x256xf32, #tpu.memory_space<vmem>>, %arg2: memref<256x256xf32, #tpu.memory_space<vmem>>, %arg3: memref<1x256xf32, #tpu.memory_space<vmem>>, %arg4: memref<1x256xf32, #tpu.memory_space<vmem>>, %arg5: memref<1x1xf32, #tpu.memory_space<smem>>, %arg6: memref<1x1xf32, #tpu.memory_space<vmem>>) attributes {dimension_semantics = [], scalar_prefetch = 0 : i64, scratch_operands = 0 : i64, tpu.core_type = #tpu.core_type<tc>} {
    %c0 = arith.constant 0 : index
    %0 = memref.load %arg0[%c0] : memref<1xi32, #tpu.memory_space<smem>>
    %1 = tpu.iota {dimensions = array<i32: 0>} : vector<16x1xi32>
    %c0_i32 = arith.constant 0 : i32
    %2 = vector.broadcast %c0_i32 : i32 to vector<16x1xi32>
    %3 = arith.cmpi sgt, %1, %2 : vector<16x1xi32>
    %c1_i32 = arith.constant 1 : i32
    %4 = arith.subi %0, %c1_i32 : i32
    %5 = vector.broadcast %4 : i32 to vector<16x1xi32>
    %6 = arith.cmpi slt, %1, %5 : vector<16x1xi32>
    %7 = arith.andi %3, %6 : vector<16x1xi1>
    %c0_0 = arith.constant 0 : index
    %c0_1 = arith.constant 0 : index
    %8 = vector.load %arg1[%c0_0, %c0_1] : memref<16x256xf32, #tpu.memory_space<vmem>>, vector<16x256xf32>
    %cst = arith.constant 0.000000e+00 : f32
    %9 = vector.shape_cast %7 : vector<16x1xi1> to vector<16x1xi1>
    %10 = vector.broadcast %9 : vector<16x1xi1> to vector<16x256xi1>
    %11 = vector.broadcast %cst : f32 to vector<16x256xf32>
    %12 = arith.select %10, %8, %11 : vector<16x256xi1>, vector<16x256xf32>
    %c2_i32 = arith.constant 2 : i32
    %13 = arith.subi %0, %c2_i32 : i32
    %14 = arith.sitofp %13 : i32 to f32
    %cst_2 = arith.constant dense<0.000000e+00> : vector<256xf32>
    %15 = vector.multi_reduction <add>, %12, %cst_2 [0] : vector<16x256xf32> to vector<256xf32>
    %16 = vector.shape_cast %15 : vector<256xf32> to vector<1x256xf32>
    %17 = vector.broadcast %14 : f32 to vector<1x256xf32>
    %18 = arith.divf %16, %17 : vector<1x256xf32>
    %c0_3 = arith.constant 0 : index
    %c0_4 = arith.constant 0 : index
    %19 = vector.load %arg2[%c0_3, %c0_4] : memref<256x256xf32, #tpu.memory_space<vmem>>, vector<256x256xf32>
    %cst_5 = arith.constant dense<0.000000e+00> : vector<1x256xf32>
    %20 = tpu.matmul %18, %19, %cst_5 {dimension_numbers = #tpu.dot_dimension_numbers<[1], [0], [0], [1], [0, 0, 1, 1], [], []>} : vector<1x256xf32>, vector<256x256xf32>, vector<1x256xf32> -> vector<1x256xf32>
    %c0_6 = arith.constant 0 : index
    %c0_7 = arith.constant 0 : index
    %21 = vector.load %arg3[%c0_6, %c0_7] : memref<1x256xf32, #tpu.memory_space<vmem>>, vector<1x256xf32>
    %22 = arith.addf %20, %21 : vector<1x256xf32>
    %cst_8 = arith.constant 0.000000e+00 : f32
    %23 = vector.broadcast %cst_8 : f32 to vector<1x256xf32>
    %24 = arith.maximumf %22, %23 : vector<1x256xf32>
    %c0_9 = arith.constant 0 : index
    %c0_10 = arith.constant 0 : index
    %25 = vector.load %arg4[%c0_9, %c0_10] : memref<1x256xf32, #tpu.memory_space<vmem>>, vector<1x256xf32>
    %26 = arith.mulf %24, %25 : vector<1x256xf32>
    %cst_11 = arith.constant dense<0.000000e+00> : vector<1xf32>
    %27 = vector.multi_reduction <add>, %26, %cst_11 [1] : vector<1x256xf32> to vector<1xf32>
    %28 = vector.shape_cast %27 : vector<1xf32> to vector<1x1xf32>
    %c0_12 = arith.constant 0 : index
    %c0_13 = arith.constant 0 : index
    %29 = memref.load %arg5[%c0_12, %c0_13] : memref<1x1xf32, #tpu.memory_space<smem>>
    %30 = vector.broadcast %29 : f32 to vector<1x1xf32>
    %31 = arith.addf %28, %30 : vector<1x1xf32>
    %c0_14 = arith.constant 0 : index
    %c0_15 = arith.constant 0 : index
    %32 = vector.load %arg6[%c0_14, %c0_15] : memref<1x1xf32, #tpu.memory_space<vmem>>, vector<1x1xf32>
    tpu.vector_store %arg6[%c0_14, %c0_15], %31 {strides = array<i32>} : memref<1x1xf32, #tpu.memory_space<vmem>>, vector<1x1xf32>,
    return
  }
}

</mosaic_0001>

<bundles_post_ra>
// kernel: tpu_custom_call.1
= control target key start
LH: loop header
LB: loop body
LE: loop exit
PB: predicated region body
PF: predicated region fallthrough
CT: control target
= control target key end

     0   :  { %13 = vsyncpa [#allocation5], 0  ;;  %s496_s0 = inlined_call_operand.<no memory space> [shape: s32[1], index: 0, kind: input, shape index: {}]   ;;  %s497_s1 = inlined_call_operand.hbm [shape: f32[16,256], index: 1, kind: input, shape index: {}]   ;;  %s498_s2 = inlined_call_operand.hbm [shape: f32[256,256], index: 2, kind: input, shape index: {}]   ;;  %s499_s3 = inlined_call_operand.vmem [shape: f32[1,256], index: 3, kind: input, shape index: {}]   ;;  %s500_s4 = inlined_call_operand.vmem [shape: f32[1,256], index: 4, kind: input, shape index: {}]   ;;  %s501_s5 = inlined_call_operand.<no memory space> [shape: f32[1,1], index: 5, kind: input, shape index: {}]   ;;  %s502_s6 = inlined_call_operand.hbm [shape: f32[1,1], index: 6, kind: output, shape index: {}]  }
   0x1   :  { %14 = vsyncpa [#allocation8], 0 }
   0x2   :  { %15 = vsyncpa [#allocation6], 0  ;;  %s22_s23 = sshll.u32 %s497_s1, 4  ;;  %s391_s24 = smov [#allocation4]   ;;  %s23_s23 = int_to_ptr.hbm [resolvable:$true] %s22_s23 }
   0x3   :  { %s24_s25 = sshll.u32 %s391_s24, 4  ;;  %s35_s28 = sshll.u32 %s498_s2, 4  ;;  %s25_s25 = int_to_ptr.vmem [resolvable:$true] %s24_s25  ;;  %s36_s28 = int_to_ptr.hbm [resolvable:$true] %s35_s28 }
   0x4   :  { %s392_s29 = smov 256   ;;  %s393_s30 = smov 16  }
   0x5   :  { %30 = dma.hbm_to_vmem [thread:$0]  %s23_s23, 512, %s25_s25, [#allocation5], %s392_s29, %s392_s29, %s393_s30  }
   0x6   :  { %s394_s7 = smov [#allocation7]  }
   0x7   :  { %s37_s8 = sshll.u32 %s394_s7, 4  ;;  %s38_s8 = int_to_ptr.vmem [resolvable:$true] %s37_s8 }
   0x8   :  { %43 = dma.hbm_to_vmem [thread:$0]  %s36_s28, 8192, %s38_s8, [#allocation8], %s392_s29, %s392_s29, %s393_s30  }
   0x9   :  { %385 = dma.done.wait [#allocation5], 512  }
   0xa   :  { %386 = vsyncadd [#allocation5], 4294966784 }
   0xb   :  { %387 = dma.done.wait [#allocation8], 8192  }
   0xc   :  { %388 = vsyncadd [#allocation8], 4294959104  ;;  %s305_s10 = sadd.s32 4294967294, %s496_s0  ;;  %v146_v0 = vld [vmem:[#allocation7 + $0xf8] sm:$0xff]  ;;  %v144_v1 = vld [vmem:[#allocation7 + $0xe8] sm:$0xff]  ;;  %v59_v16 = vlaneseq  ;;  %s304_s13 = sadd.s32 4294967295, %s496_s0 }
   0xd   :  { %s83_s11 = scvt.s32.f32 %s305_s10  ;;  %v178_v2 = vld [vmem:[#allocation7 + $0x1f8] sm:$0xff]  ;;  %225 = vmatpush.msra.mxu2 %v146_v0  ;;  %v176_v3 = vld [vmem:[#allocation7 + $0x1e8] sm:$0xff]  ;;  %v145_v4 = vld [vmem:[#allocation7 + $0xf0] sm:$0xff]  ;;  %v448_v29 = vstv %s304_s13  ;;  %vm275_vm8 = vcmask 1040384   ;;  %s293_s21 = sshll.u32 %s502_s6, 4  ;;  %vm284_vm9 = vcmask 0   ;;  %s294_s21 = int_to_ptr.hbm [resolvable:$true] %s293_s21 }
   0xe   :  { %245 = vmatpush.msra.mxu3 %v178_v2  ;;  %v142_v6 = vld [vmem:[#allocation7 + $0xd8] sm:$0xff]  ;;  %185 = vmatpush.msra.mxu0 %v145_v4  ;;  %v143_v8 = vld [vmem:[#allocation7 + $0xe0] sm:$0xff]  ;;  %v140_v9 = vld [vmem:[#allocation7 + $0xc8] sm:$0xff]  ;;  %v60_v25 = vshrl.u32 %v59_v16, 7 }
   0xf   :  { %v440_v5 = vstv %s83_s11  ;;  %v174_v7 = vld [vmem:[#allocation7 + $0x1d8] sm:$0xff]  ;;  %226 = vmatpush.msra.mxu2 %v144_v1  ;;  %v177_v10 = vld [vmem:[#allocation7 + $0x1f0] sm:$0xff]  ;;  %v172_v11 = vld [vmem:[#allocation7 + $0x1c8] sm:$0xff] }
  0x10   :  { %246 = vmatpush.msra.mxu3 %v176_v3  ;;  %186 = vmatpush.msra.mxu0 %v143_v8  ;;  %v141_v12 = vld [vmem:[#allocation7 + $0xd0] sm:$0xff]  ;;  %v175_v13 = vld [vmem:[#allocation7 + $0x1e0] sm:$0xff]  ;;  %311 = vrcp.f32 %v440_v5  ;;  %v138_v17 = vld [vmem:[#allocation7 + $0xb8] sm:$0xff]  ;;  %v61_v36 = vadd.s32 8, %v60_v25  ;;  %vm62_vm0 = vcmp.gt.s32.totalorder %v60_v25, 0  ;;  %vm66_vm1 = vcmp.lt.s32.totalorder %v60_v25, %v448_v29 }
  0x11   :  { %205 = vmatpush.msra.mxu1 %v177_v10  ;;  %227 = vmatpush.msra.mxu2 %v142_v6  ;;  %v139_v14 = vld [vmem:[#allocation7 + $0xc0] sm:$0xff]  ;;  %v173_v15 = vld [vmem:[#allocation7 + $0x1d0] sm:$0xff]  ;;  %v170_v18 = vld [vmem:[#allocation7 + $0x1b8] sm:$0xff]  ;;  %vm104_vm4 = vweird.f32 %v440_v5 }
  0x12   :  { %247 = vmatpush.msra.mxu3 %v174_v7  ;;  %187 = vmatpush.msra.mxu0 %v141_v12  ;;  %v137_v19 = vld [vmem:[#allocation7 + $0xb0] sm:$0xff]  ;;  %v171_v20 = vld [vmem:[#allocation7 + $0x1c0] sm:$0xff]  ;;  %v136_v21 = vld [vmem:[#allocation7 + $0xa8] sm:$0xff]  ;;  %vm67_vm3 = vcmp.lt.s32.totalorder %v61_v36, %v448_v29 }
  0x13   :  { %206 = vmatpush.msra.mxu1 %v175_v13  ;;  %228 = vmatpush.msra.mxu2 %v140_v9  ;;  %v168_v22 = vld [vmem:[#allocation7 + $0x1a8] sm:$0xff]  ;;  %v135_v23 = vld [vmem:[#allocation7 + $0xa0] sm:$0xff]  ;;  %v169_v24 = vld [vmem:[#allocation7 + $0x1b0] sm:$0xff] }
  0x14   :  { %248 = vmatpush.msra.mxu3 %v172_v11  ;;  %188 = vmatpush.msra.mxu0 %v139_v14  ;;  %v134_v27 = vld [vmem:[#allocation7 + $0x98] sm:$0xff]  ;;  %v133_v30 = vld [vmem:[#allocation7 + $0x90] sm:$0xff]  ;;  %v167_v31 = vld [vmem:[#allocation7 + $0x1a0] sm:$0xff]  ;;  %v110_v11 = vand.u32 2147483648, %v440_v5  ;;  %v108_v14 = vand.u32 2147483647, %v440_v5 }
  0x15   :  { %207 = vmatpush.msra.mxu1 %v173_v15  ;;  %229 = vmatpush.msra.mxu2 %v138_v17  ;;  %v166_v28 = vld [vmem:[#allocation7 + $0x198] sm:$0xff]  ;;  %v132_v32 = vld [vmem:[#allocation7 + $0x88] sm:$0xff]  ;;  %v131_v34 = vld [vmem:[#allocation7 + $0x80] sm:$0xff] }
  0x16   :  { %249 = vmatpush.msra.mxu3 %v170_v18  ;;  %v446_v26 = vpop.eup %311  ;;  %189 = vmatpush.msra.mxu0 %v137_v19  ;;  %v164_v33 = vld [vmem:[#allocation7 + $0x188] sm:$0xff]  ;;  %v165_v35 = vld [vmem:[#allocation7 + $0x190] sm:$0xff]  ;;  %v130_v38 = vld [vmem:[#allocation7 + $0x78] sm:$0xff]  ;;  %vm109_vm7 = vcmp.eq.f32.partialorder %v108_v14, 8.507059e+37 }
  0x17   :  { %208 = vmatpush.msra.mxu1 %v171_v20  ;;  %230 = vmatpush.msra.mxu2 %v136_v21  ;;  %v100_v37 = vmul.f32 %v446_v26, %v440_v5  ;;  %v162_v39 = vld [vmem:[#allocation7 + $0x178] sm:$0xff]  ;;  %v129_v40 = vld [vmem:[#allocation7 + $0x70] sm:$0xff]  ;;  %v163_v41 = vld [vmem:[#allocation7 + $0x180] sm:$0xff]  ;;  %vm105_vm5 = vweird.f32 %v446_v26 }
  0x18   :  { %250 = vmatpush.msra.mxu3 %v168_v22  ;;  %190 = vmatpush.msra.mxu0 %v135_v23  ;;  %v128_v42 = vld [vmem:[#allocation7 + $0x68] sm:$0xff]  ;;  %vm454_vm2 = vmand %vm62_vm0, %vm66_vm1  ;;  %v127_v45 = vld [vmem:[#allocation7 + $0x60] sm:$0xff] }
  0x19   :  { %209 = vmatpush.msra.mxu1 %v169_v24  ;;  %231 = vmatpush.msra.mxu2 %v134_v27  ;;  %v160_v43 = vld [vmem:[#allocation7 + $0x168] sm:$0xff]  ;;  %v161_v46 = vld [vmem:[#allocation7 + $0x170] sm:$0xff]  ;;  %v101_v47 = vsub.f32 1.0, %v100_v37  ;;  %v126_v48 = vld [vmem:[#allocation7 + $0x58] sm:$0xff]  ;;  %v111_v27 = vor.u32 1.1754944e-38, %v110_v11 }
  0x1a   :  { %251 = vmatpush.msra.mxu3 %v166_v28  ;;  %191 = vmatpush.msra.mxu0 %v133_v30  ;;  %v158_v49 = vld [vmem:[#allocation7 + $0x158] sm:$0xff]  ;;  %v70_v50 = vld [vmem:[#allocation4] sm:$0xff]  ;;  %v125_v51 = vld [vmem:[#allocation7 + $0x50] sm:$0xff] }
  0x1b   :  { %210 = vmatpush.msra.mxu1 %v167_v31  ;;  %232 = vmatpush.msra.mxu2 %v132_v32  ;;  %v159_v52 = vld [vmem:[#allocation7 + $0x160] sm:$0xff]  ;;  %v72_v53 = vld [vmem:[#allocation4 + $0x10] sm:$0xff]  ;;  %v78_v54 = vsel %vm454_vm2, %v70_v50, 0.0  ;;  %v124_v55 = vld [vmem:[#allocation7 + $0x48] sm:$0xff]  ;;  %v102_v62 = vmul.f32 %v446_v26, %v101_v47 }
  0x1c   :  { %252 = vmatpush.msra.mxu3 %v164_v33  ;;  %192 = vmatpush.msra.mxu0 %v131_v34  ;;  %v156_v56 = vld [vmem:[#allocation7 + $0x148] sm:$0xff]  ;;  %v80_v57 = vsel %vm67_vm3, %v72_v53, 0.0  ;;  %v123_v59 = vld [vmem:[#allocation7 + $0x40] sm:$0xff]  ;;  %v157_v60 = vld [vmem:[#allocation7 + $0x150] sm:$0xff] }
  0x1d   :  { %211 = vmatpush.msra.mxu1 %v165_v35  ;;  %233 = vmatpush.msra.mxu2 %v130_v38  ;;  %v71_v58 = vld [vmem:[#allocation4 + $0x8] sm:$0xff]  ;;  %v84_v61 = vadd.f32 %v80_v57, %v78_v54  ;;  %v73_v63 = vld [vmem:[#allocation4 + $0x18] sm:$0xff]  ;;  %v121_v4 = vld [vmem:[#allocation7 + $0x30] sm:$0xff]  ;;  %v103_v13 = vadd.f32 %v446_v26, %v102_v62  ;;  %v282_v62 = vstv %s501_s5 }
  0x1e   :  { %253 = vmatpush.msra.mxu3 %v162_v39  ;;  %193 = vmatpush.msra.mxu0 %v129_v40  ;;  %v79_v0 = vsel %vm454_vm2, %v71_v58, 0.0  ;;  %v122_v1 = vld [vmem:[#allocation7 + $0x38] sm:$0xff]  ;;  %v81_v3 = vsel %vm67_vm3, %v73_v63, 0.0  ;;  %v155_v6 = vld [vmem:[#allocation7 + $0x140] sm:$0xff]  ;;  %v120_v9 = vld [vmem:[#allocation7 + $0x28] sm:$0xff] }
  0x1f   :  { %212 = vmatpush.msra.mxu1 %v163_v41  ;;  %234 = vmatpush.msra.mxu2 %v128_v42  ;;  %v154_v2 = vld [vmem:[#allocation7 + $0x138] sm:$0xff]  ;;  %v85_v7 = vrot.slane %v84_v61, 4  ;;  %v91_v8 = vadd.f32 %v81_v3, %v79_v0  ;;  %v152_v10 = vld [vmem:[#allocation7 + $0x128] sm:$0xff]  ;;  %v119_v15 = vld [vmem:[#allocation7 + $0x20] sm:$0xff] }
  0x20   :  { %254 = vmatpush.msra.mxu3 %v160_v43  ;;  %194 = vmatpush.msra.mxu0 %v127_v45  ;;  %v153_v16 = vld [vmem:[#allocation7 + $0x130] sm:$0xff]  ;;  %v118_v18 = vld [vmem:[#allocation7 + $0x18] sm:$0xff]  ;;  %vm477_vm6 = vmor %vm104_vm4, %vm105_vm5 }
  0x21   :  { %213 = vmatpush.msra.mxu1 %v161_v46  ;;  %235 = vmatpush.msra.mxu2 %v126_v48  ;;  %v86_v12 = vadd.f32 %v85_v7, %v84_v61  ;;  %v92_v17 = vrot.slane %v91_v8, 4  ;;  %v150_v19 = vld [vmem:[#allocation7 + $0x118] sm:$0xff]  ;;  %v117_v23 = vld [vmem:[#allocation7 + $0x10] sm:$0xff]  ;;  %v151_v24 = vld [vmem:[#allocation7 + $0x120] sm:$0xff]  ;;  %v107_v5 = vsel %vm477_vm6, %v446_v26, %v103_v13 }
  0x22   :  { %255 = vmatpush.msra.mxu3 %v158_v49  ;;  %195 = vmatpush.msra.mxu0 %v125_v51  ;;  %v116_v25 = vld [vmem:[#allocation7 + $0x8] sm:$0xff]  ;;  %v115_v31 = vld [vmem:[#allocation7] sm:$0xff]  ;;  %v149_v32 = vld [vmem:[#allocation7 + $0x110] sm:$0xff]  ;;  %v112_v36 = vsel %vm109_vm7, %v111_v27, %v107_v5 }
  0x23   :  { %214 = vmatpush.msra.mxu1 %v159_v52  ;;  %236 = vmatpush.msra.mxu2 %v124_v55  ;;  %v87_v21 = vrot.slane %v86_v12, 2  ;;  %v93_v22 = vadd.f32 %v92_v17, %v91_v8  ;;  %v148_v28 = vld [vmem:[#allocation7 + $0x108] sm:$0xff]  ;;  %v147_v35 = vld [vmem:[#allocation7 + $0x100] sm:$0xff] }
  0x24   :  { %256 = vmatpush.msra.mxu3 %v156_v56  ;;  %196 = vmatpush.msra.mxu0 %v123_v59  ;;  %v179_v41 = vld [vmem:[%s499_s3] sm:$0x3] }
  0x25   :  { %215 = vmatpush.msra.mxu1 %v157_v60  ;;  %237 = vmatpush.msra.mxu2 %v122_v1  ;;  %v88_v29 = vadd.f32 %v87_v21, %v86_v12  ;;  %v94_v30 = vrot.slane %v93_v22, 2  ;;  %v181_v42 = vperm.slane %v179_v41, 0  ;;  %v267_v46 = vld [vmem:[%s500_s4] sm:$0x3]  ;;  %v182_v47 = vperm.slane %v179_v41, 1  ;;  %s395_s4 = smov [#allocation9]  }
  0x26   :  { %257 = vmatpush.msra.mxu3 %v154_v2  ;;  %197 = vmatpush.msra.mxu0 %v121_v4  ;;  %v269_v50 = vperm.slane %v267_v46, 0  ;;  %v270_v55 = vperm.slane %v267_v46, 1  ;;  %s291_s18 = sshll.u32 %s395_s4, 4  ;;  %s292_s18 = int_to_ptr.vmem [resolvable:$true] %s291_s18 }
  0x27   :  { %216 = vmatpush.msra.mxu1 %v155_v6  ;;  %238 = vmatpush.msra.mxu2 %v120_v9  ;;  %v89_v33 = vrot.slane %v88_v29, 1  ;;  %v95_v34 = vadd.f32 %v94_v30, %v93_v22 }
  0x28   :  { %258 = vmatpush.msra.mxu3 %v152_v10  ;;  %198 = vmatpush.msra.mxu0 %v119_v15 }
  0x29   :  { %217 = vmatpush.msra.mxu1 %v153_v16  ;;  %239 = vmatpush.msra.mxu2 %v118_v18  ;;  %v90_v37 = vadd.f32 %v89_v33, %v88_v29  ;;  %v96_v38 = vrot.slane %v95_v34, 1 }
  0x2a   :  { %259 = vmatpush.msra.mxu3 %v150_v19  ;;  %199 = vmatpush.msra.mxu0 %v117_v23 }
  0x2b   :  { %218 = vmatpush.msra.mxu1 %v151_v24  ;;  %240 = vmatpush.msra.mxu2 %v116_v25  ;;  %v113_v39 = vmul.f32 %v112_v36, %v90_v37  ;;  %v97_v40 = vadd.f32 %v96_v38, %v95_v34 }
  0x2c   :  { %260 = vmatpush.msra.mxu3 %v148_v28  ;;  %200 = vmatpush.msra.mxu0 %v115_v31 }
  0x2d   :  { %219 = vmatpush.msra.mxu1 %v149_v32  ;;  %241 = vmatmul.f32.vlgmr.msra.gmra.mxu2 %v113_v39  ;;  %v114_v26 = vmul.f32 %v112_v36, %v97_v40 }
  0x2e   :  { %201 = vmatmul.f32.vlgmr.msra.gmra.mxu0 %v113_v39 }
  0x2f   :  { %220 = vmatpush.msra.mxu1 %v147_v35  ;;  %261 = vmatmul.f32.vlgmr.msra.gmra.mxu3 %v114_v26 }
  0x30   :  { %221 = vmatmul.f32.vlgmr.msra.gmra.mxu1 %v114_v26 }
  0xab   :  { %v202_v43 = vpop.f32.mrf.mxu0 }
  0xac   :  { %v203_v44 = vadd.f32 %v202_v43, %v181_v42 }
  0xad   :  { %v222_v45 = vpop.f32.mrf.mxu1 }
  0xae   :  { %v223_v48 = vadd.f32 %v222_v45, %v203_v44 }
  0xb0   :  { %v265_v49 = vmax.f32 %v223_v48, 0.0  ;;  %v242_v51 = vpop.f32.mrf.mxu2 }
  0xb1   :  { %v243_v52 = vadd.f32 %v242_v51, %v182_v47 }
  0xb2   :  { %v262_v53 = vpop.f32.mrf.mxu3  ;;  %v273_v56 = vmul.f32 %v269_v50, %v265_v49 }
  0xb3   :  { %v263_v54 = vadd.f32 %v262_v53, %v243_v52 }
  0xb4   :  { %v276_v59 = vsel %vm275_vm8, %v273_v56, 0.0 }
  0xb5   :  { %v266_v57 = vmax.f32 %v263_v54, 0.0 }
  0xb7   :  { %v274_v58 = vmul.f32 %v270_v55, %v266_v57 }
  0xb9   :  { %v277_v60 = vsel %vm275_vm8, %v274_v58, 0.0 }
  0xba   :  { %v278_v61 = vadd.f32 %v277_v60, %v276_v59 }
  0xbc   :  { %279 = vadd.xlane.f32.xlu0 %v278_v61 }
 0x12f   :  { %v280_v63 = vpop.xlane.xlu0 %279 }
 0x130   :  { %v283_v0 = vadd.f32 %v282_v62, %v280_v63 }
 0x132   :  { %285 = vst.msk [vmem:[#allocation9] sm:$0x1] %vm284_vm9, %v283_v0 }
 0x133   :  { %296 = dma.vmem_to_hbm [thread:$0]  %s292_s18, 16, %s294_s21, [#allocation6]  }
 0x134   :  { %389 = dma.done.wait [#allocation6], 16  }
 0x135   :  { %390 = vsyncadd [#allocation6], 4294967280 }
 0x136   :  { %301 = vsyncpa [#allocation5], 1 }
 0x137   :  { %302 = vsyncpa [#allocation8], 1 }
 0x138   :  { %303 = vsyncpa [#allocation6], 1 }

</bundles_post_ra>
